<compile_context>
chip_gen: v6e
topology: v6e:2x2x1
jax: 0.10.0
libtpu: 0.0.40
codegen_flags: <defaults>
</compile_context>

<pallas_src>
import jax
import jax.numpy as jnp
from jax.experimental import pallas as pl
from jax.experimental.pallas import tpu as pltpu

_LANES = 128
# Max sublane rows per feature tile: 1024 rows * 128 lanes * 4 B = 512 KiB per
# buffer -> ~2.5 MiB total (2 in + 2 out + scratch), safe on v5e/v6e/v7x VMEM.
_MAX_TILE_ROWS = 1024


def if_forward(x_seq, v_th=1.0):
    """IF neuron forward. x_seq: [T, ...] float array. Returns spikes, same shape/dtype."""
    T = x_seq.shape[0]
    orig_shape = x_seq.shape
    n = 1
    for d in orig_shape[1:]:
        n *= d
    flat = x_seq.reshape(T, n)

    # Choose feature tiling: R rows of 128 lanes, tiled into TR-row blocks.
    R = pl.cdiv(n, _LANES)
    if R <= _MAX_TILE_ROWS:
        TR = R                       # single full-extent tile (any R allowed)
        R_pad = R
    else:
        TR = _MAX_TILE_ROWS          # multiple of 8 -> satisfies (8,128) rule
        R_pad = ((R + TR - 1) // TR) * TR
    n_pad = R_pad * _LANES

    # Fast path: no pad when the feature dim already tiles cleanly.
    # TODO(synk): handle the ragged tail with an in-kernel masked store
    # (pltpu.store with a lane mask) instead of a padded HBM copy.
    if n_pad != n:
        flat = jnp.pad(flat, ((0, 0), (0, n_pad - n)))
    xr = flat.reshape(T, R_pad, _LANES)
    num_row_tiles = R_pad // TR

    v_th_f = float(v_th)
    out_dtype = x_seq.dtype

    def kernel(x_ref, y_ref, v_ref):
        # v_ref: persistent per-feature-tile membrane voltage (VMEM scratch).
        # Time is grid axis 1 (innermost / sequential) -> reset at t == 0.
        @pl.when(pl.program_id(1) == 0)
        def _():
            v_ref[...] = jnp.zeros_like(v_ref)

        m = v_ref[...] + x_ref[0].astype(jnp.float32)
        fired = m >= v_th_f
        v_ref[...] = jnp.where(fired, m - v_th_f, m)   # soft reset, no extra mul
        y_ref[0] = fired.astype(y_ref.dtype)

    itemsize = jnp.dtype(out_dtype).itemsize
    cost = pl.CostEstimate(
        flops=3 * T * n_pad,                 # add + cmp + sub per element
        transcendentals=0,
        bytes_accessed=T * n_pad * (itemsize + itemsize),
    )

    out = pl.pallas_call(
        kernel,
        out_shape=jax.ShapeDtypeStruct((T, R_pad, _LANES), out_dtype),
        grid_spec=pltpu.PrefetchScalarGridSpec(
            num_scalar_prefetch=0,
            grid=(num_row_tiles, T),
            in_specs=[pl.BlockSpec((1, TR, _LANES), lambda r, t: (t, r, 0))],
            out_specs=pl.BlockSpec((1, TR, _LANES), lambda r, t: (t, r, 0)),
            scratch_shapes=[pltpu.VMEM((TR, _LANES), jnp.float32)],
        ),
        compiler_params=pltpu.CompilerParams(
            # feature tiles are independent (megacore-shardable on v7x);
            # time recurrence must stay sequential and innermost.
            dimension_semantics=("parallel", "arbitrary"),
        ),
        cost_estimate=cost,
    )(xr)

    out_flat = out.reshape(T, n_pad)
    if n_pad != n:
        out_flat = out_flat[:, :n]
    return out_flat.reshape(orig_shape)


class IF:
    """JAX/Pallas mirror of the PyTorch IF module (forward only)."""

    def __init__(self, thresh=1.0, alpha=1.0):
        self.v_th = thresh
        self.alpha = alpha  # TODO(synk): alpha only affects the surrogate-gradient backward.

    def __call__(self, x):
        return if_forward(x, self.v_th)


def _reference(x_seq, v_th):
    # Pure-JAX reference using lax.scan for validation.
    def step(v, x):
        m = v + x
        y = (m >= v_th).astype(x.dtype)
        return m - y * v_th, y

    _, y_seq = jax.lax.scan(step, jnp.zeros_like(x_seq[0]), x_seq)
    return y_seq


if __name__ == "__main__":
    key = jax.random.PRNGKey(0)

    # Primary case: [T, B, C, H, W] = [8, 2, 4, 16, 16] (feature dim tiles cleanly).
    T, B, C, H, W = 8, 2, 4, 16, 16
    k1, k2 = jax.random.split(key)
    x = jax.random.normal(k1, (T, B, C, H, W), dtype=jnp.float32) * 0.8 + 0.2

    module = IF(thresh=1.0, alpha=1.0)
    y = module(x)
    y = jax.block_until_ready(y)
    y_ref = _reference(x, 1.0)
    assert y.shape == x.shape and y.dtype == x.dtype
    assert jnp.allclose(y, y_ref, atol=1e-6), "Pallas IF kernel mismatch vs reference"

    # Ragged case exercising the pad path: feature dim not a multiple of 128.
    x2 = jax.random.normal(k2, (4, 3, 5, 7), dtype=jnp.float32) * 0.8 + 0.2
    y2 = jax.block_until_ready(module(x2))
    y2_ref = _reference(x2, 1.0)
    assert y2.shape == x2.shape and y2.dtype == x2.dtype
    assert jnp.allclose(y2, y2_ref, atol=1e-6), "Pallas IF kernel mismatch (ragged case)"

    print("KERNEL_OK")
</pallas_src>

<mosaic_0001>
module attributes {stable_mosaic.version = 11 : i64} {
  func.func @kernel(%arg0: i32, %arg1: i32, %arg2: memref<1x16x128xf32, #tpu.memory_space<vmem>>, %arg3: memref<1x16x128xf32, #tpu.memory_space<vmem>>, %arg4: memref<16x128xf32, #tpu.memory_space<vmem>>) attributes {dimension_semantics = [#tpu.dimension_semantics<parallel>, #tpu.dimension_semantics<arbitrary>], iteration_bounds = array<i64: 1, 8>, scalar_prefetch = 0 : i64, scratch_operands = 1 : i64, tpu.core_type = #tpu.core_type<tc>, window_params = [{transform_indices = @transform_0, window_bounds = array<i64: 1, 16, 128>}, {transform_indices = @transform_1, window_bounds = array<i64: 1, 16, 128>}]} {
    %c0_i32 = arith.constant 0 : i32
    %0 = arith.cmpi eq, %arg1, %c0_i32 : i32
    %1 = arith.extui %0 : i1 to i32
    %c0_i32_0 = arith.constant 0 : i32
    %2 = arith.cmpi ne, %1, %c0_i32_0 : i32
    scf.if %2 {
      %cst_11 = arith.constant 0.000000e+00 : f32
      %18 = vector.broadcast %cst_11 : f32 to vector<16x128xf32>
      %c0_12 = arith.constant 0 : index
      %c0_13 = arith.constant 0 : index
      %19 = vector.load %arg4[%c0_12, %c0_13] : memref<16x128xf32, #tpu.memory_space<vmem>>, vector<16x128xf32>
      tpu.vector_store %arg4[%c0_12, %c0_13], %18 {strides = array<i32>} : memref<16x128xf32, #tpu.memory_space<vmem>>, vector<16x128xf32>,
    } else {
    }
    %c0 = arith.constant 0 : index
    %c0_1 = arith.constant 0 : index
    %3 = vector.load %arg4[%c0, %c0_1] : memref<16x128xf32, #tpu.memory_space<vmem>>, vector<16x128xf32>
    %c0_2 = arith.constant 0 : index
    %c0_3 = arith.constant 0 : index
    %c0_4 = arith.constant 0 : index
    %4 = vector.load %arg2[%c0_2, %c0_3, %c0_4] : memref<1x16x128xf32, #tpu.memory_space<vmem>>, vector<1x16x128xf32>
    %5 = vector.shape_cast %4 : vector<1x16x128xf32> to vector<16x128xf32>
    %6 = arith.addf %3, %5 : vector<16x128xf32>
    %cst = arith.constant 1.000000e+00 : f32
    %7 = vector.broadcast %cst : f32 to vector<16x128xf32>
    %8 = arith.cmpf oge, %6, %7 : vector<16x128xf32>
    %cst_5 = arith.constant 1.000000e+00 : f32
    %9 = vector.broadcast %cst_5 : f32 to vector<16x128xf32>
    %10 = arith.subf %6, %9 : vector<16x128xf32>
    %11 = arith.select %8, %10, %6 : vector<16x128xi1>, vector<16x128xf32>
    %c0_6 = arith.constant 0 : index
    %c0_7 = arith.constant 0 : index
    %12 = vector.load %arg4[%c0_6, %c0_7] : memref<16x128xf32, #tpu.memory_space<vmem>>, vector<16x128xf32>
    tpu.vector_store %arg4[%c0_6, %c0_7], %11 {strides = array<i32>} : memref<16x128xf32, #tpu.memory_space<vmem>>, vector<16x128xf32>,
    %13 = arith.extui %8 : vector<16x128xi1> to vector<16x128xi32>
    %14 = arith.sitofp %13 : vector<16x128xi32> to vector<16x128xf32>
    %c0_8 = arith.constant 0 : index
    %c0_9 = arith.constant 0 : index
    %c0_10 = arith.constant 0 : index
    %15 = vector.load %arg3[%c0_8, %c0_9, %c0_10] : memref<1x16x128xf32, #tpu.memory_space<vmem>>, vector<1x16x128xf32>
    %16 = vector.shape_cast %15 : vector<1x16x128xf32> to vector<16x128xf32>
    %17 = vector.shape_cast %14 : vector<16x128xf32> to vector<1x16x128xf32>
    tpu.vector_store %arg3[%c0_8, %c0_9, %c0_10], %17 {strides = array<i32>} : memref<1x16x128xf32, #tpu.memory_space<vmem>>, vector<1x16x128xf32>,
    return
  }
  func.func @transform_0(%arg0: i32, %arg1: i32) -> (i32, i32, i32) {
    %c0_i32 = arith.constant 0 : i32
    %c0_i32_0 = arith.constant 0 : i32
    return %arg1, %arg0, %c0_i32 : i32, i32, i32
  }
  func.func @transform_1(%arg0: i32, %arg1: i32) -> (i32, i32, i32) {
    %c0_i32 = arith.constant 0 : i32
    %c0_i32_0 = arith.constant 0 : i32
    return %arg1, %arg0, %c0_i32 : i32, i32, i32
  }
}

</mosaic_0001>

<bundles_post_ra>
// kernel: tpu_custom_call.1
= control target key start
LH: loop header
LB: loop body
LE: loop exit
PB: predicated region body
PF: predicated region fallthrough
CT: control target
= control target key end

     0   :  { %6 = vsyncpa [#allocation4], 0  ;;  %s647_s0 = inlined_call_operand.hbm [shape: f32[8,16,128], index: 0, kind: input, shape index: {}]   ;;  %s648_s1 = inlined_call_operand.hbm [shape: f32[8,16,128], index: 1, kind: output, shape index: {}]  }
   0x1   :  { %8 = vsyncpa [#allocation4 + $0x1], 0 }
   0x2   :  { %9 = vsyncpa [#allocation5], 0 }
   0x3   :  { %11 = vsyncpa [#allocation5 + $0x1], 0  ;;  %s502_s6 = smov 0   ;;  %s504_s7 = smov 0  }
   0x4   :  { %s506_s8 = smov 0   ;;  %s508_s9 = smov 0  }
   0x5   :  { %s510_s10 = smov 0   ;;  %s512_s11 = smov 0  }
   0x6 LB: > { %s284_s12 = sadd.s32 4294967295, %s482_s11   ;;  %s285_s13 = sadd.s32 4294967294, %s482_s11   ;;  %s482_s11 = sphi %s512_s11, %s17_s11   ;;  %s478_s10 = sphi %s510_s10, %s658_s10   ;;  %s474_s9 = sphi %s508_s9, %s657_s9   ;;  %s470_s8 = sphi %s506_s8, %s656_s8   ;;  %s466_s7 = sphi %s504_s7, %s655_s7   ;;  %s462_s6 = sphi %s502_s6, %s654_s6  }
   0x7   : > { %s26_s14 = sadd.s32 1, %s478_s10  ;;  %s38_s15 = sadd.s32 1, %s470_s8 }
   0x8   : > { %p27_p0 = scmp.ge.s32.totalorder %s26_s14, 8  ;;  %p45_p1 = scmp.ne.s32.totalorder %s470_s8, %s466_s7 }
   0x9   : > { %p46_p2 = scmp.eq.s32.totalorder %s482_s11, 0  ;;  %p51_p3 = scmp.ne.s32.totalorder %s466_s7, %s462_s6 }
   0xa   : > { %s660_s14 = smov (%p27_p0, %s26_s14), 0  ;;  %p52_p5 = scmp.eq.s32.totalorder %s284_s12, 0 }
   0xb   : > { %p543_p4 = por %p46_p2, %p45_p1  ;;  %s33_s17 = ssub.s32 %s478_s10, %s660_s14 }
   0xc   : > { %p77_p6 = scmp.eq.s32.totalorder %s284_s12, 7  ;;  %p36_p7 = scmp.eq.s32.totalorder %s33_s17, 0 }
   0xd   : > { %p549_p8 = por %p52_p5, %p51_p3  ;;  %p83_p10 = scmp.eq.s32.totalorder %s285_s13, 7 }
   0xe   : > { %p553_p9 = por %p77_p6, %p45_p1  ;;  %p318_p12 = scmp.lt.s32.totalorder %s482_s11, 8 }
   0xf   : > { %s558_s20 = scalar_select %p36_p7, %s470_s8, %s38_s15  }
  0x10   : > { %p560_p11 = por %p83_p10, %p51_p3  ;;  %s103_s22 = sand.u32 1, %s470_s8  }
  0x11   : > { %s288_s23 = sshll.u32 %s103_s22, 4  ;;  %s304_s24 = sshll.u32 %s478_s10, 8 }
  0x12   : > { %s115_s27 = scalar_lea.hbm %s647_s0, %s304_s24  ;;  %s107_s28 = scalar_lea.vmem [#allocation3], %s288_s23 }
  0x13   : > { %s116_s29 = sshll.u32 %s107_s28, 4  ;;  %p572_p13 = pnand %p318_p12, %p543_p4  ;;  %s117_s29 = int_to_ptr.vmem [resolvable:$true] %s116_s29 }
  0x14   : > { %p291_p0 = scmp.ge.s32.totalorder %s482_s11, 1  ;;  %s104_s2 = scalar_lea.sflag [#allocation4], %s103_s22 }
  0x15   : > { %p376_p1 = pneg %p572_p13  ;;  %s387_s3 = scalar_lea.vmem %s117_s29, 256 }
  0x16   : > { %p388_p2 = scmp.ne.s32.totalorder %s117_s29, %s387_s3  ;;  %s484_s4 = smov [#allocation3]  }
  0x17   : > { %s392_s5 = sshll.u32 %s484_s4, 4  ;;  %s393_s5 = int_to_ptr.vmem [resolvable:$false] %s392_s5 }
  0x18   : > { %p390_p3 = pnand %p388_p2, %p376_p1  ;;  %s394_s12 = scalar_lea.vmem %s393_s5, 512 }
  0x19   : > { %p395_p6 = scmp.lt.s32.totalorder %s117_s29, %s393_s5  ;;  %p396_p7 = scmp.lt.s32.totalorder %s394_s12, %s387_s3 }
  0x1a   : > { %p391_p5 = pneg %p390_p3 }
  0x1b   : > { %p397_p10 = por %p396_p7, %p395_p6 }
  0x1d   : > { %p398_p4 = pnand %p397_p10, %p391_p5 }
  0x1f   : > { %401 = shalt.err (!%p398_p4)
}
  0x20   : > { %s485_s13 = smov 128   ;;  %s486_s15 = smov 8  }
  0x21   : > { %313 = dma.hbm_to_vmem [thread:$0]  (!%p572_p13), %s115_s27, 256, %s117_s29, %s104_s2, %s485_s13, %s485_s13, %s486_s15  }
  0x22   : > { %p124_p12 = scmp.lt.s32.totalorder %s482_s11, 9 }
  0x24   : > { %p125_p1 = pnand %p291_p0, %p124_p12 }
  0x25   : > { %s585_s16 = sand.u32 (!%p125_p1), 1, %s466_s7  }
  0x26   : > { %128 = sbr.rel (%p125_p1) target bundleno = 79 (0x4f), region = 24  ;;  %s292_s17 = sshll.u32 (!%p125_p1), %s585_s16, 4 }
  0x27   : > { %s131_s22 = scalar_lea.sflag (!%p125_p1), [#allocation4], %s585_s16  ;;  %s134_s23 = scalar_lea.vmem (!%p125_p1), [#allocation3], %s292_s17 }
  0x2b   : > { %453 = dma.done.wait (%p549_p8), %s131_s22, 256  }
  0x2c   : > { %455 = vsyncadd (%p549_p8), %s131_s22, 4294967040  ;;  %s152_s24 = scalar_lea.vmem [#allocation6], %s292_s17  ;;  %p294_p13 = scmp.ne.s32.totalorder %s474_s9, 0 }
  0x2e   : > { %158 = sbr.rel (%p294_p13) target bundleno = 53 (0x35), region = 32 }
  0x33   : > { %v487_v0 = vmov 0.0  }
  0x34   : > { %159 = vst [vmem:[#allocation2] sm:$0xff] %v487_v0  ;;  %160 = vst [vmem:[#allocation2 + $0x8] sm:$0xff] %v487_v0 }
  0x35 PF: > { %v163_v2 = vld [vmem:[%s134_s23] sm:$0xff]  ;;  %s305_s25 = sshll.u32 %s474_s9, 8  ;;  %v164_v5 = vld [vmem:[%s134_s23 + $0x8] sm:$0xff]  ;;  %s197_s26 = sshll.u32 %s152_s24, 4  ;;  %v488_v8 = vmov 0.0   ;;  %s600_s26 = int_to_ptr.vmem [resolvable:$true] %s197_s26 }
  0x36   : > { %s598_s28 = scalar_lea.hbm %s648_s1, %s305_s25  ;;  %s182_s9 = scalar_lea.sflag [#allocation5], %s585_s16 }
  0x37   : > { %s402_s29 = scalar_lea.vmem %s600_s26, 256  ;;  %s489_s30 = smov [#allocation6]  }
  0x38   : > { %p403_p8 = scmp.ne.s32.totalorder %s600_s26, %s402_s29  ;;  %s406_s2 = sshll.u32 %s489_s30, 4  ;;  %s407_s2 = int_to_ptr.vmem [resolvable:$false] %s406_s2 }
  0x39   : > { %s408_s3 = scalar_lea.vmem %s407_s2, 512  ;;  %p409_p3 = scmp.lt.s32.totalorder %s600_s26, %s407_s2 }
  0x3a   : > { %p404_p0 = pnand %p403_p8, %p553_p9  ;;  %p410_p5 = scmp.lt.s32.totalorder %s408_s3, %s402_s29 }
  0x3b   : > { %v161_v1 = vld [vmem:[#allocation2] sm:$0xff]  ;;  %v162_v3 = vld [vmem:[#allocation2 + $0x8] sm:$0xff] }
  0x3c   : > { %v165_v4 = vadd.f32 %v163_v2, %v161_v1  ;;  %v166_v6 = vadd.f32 %v164_v5, %v162_v3  ;;  %p405_p2 = pneg %p404_p0  ;;  %p411_p6 = por %p410_p5, %p409_p3 }
  0x3e   : > { %vm167_vm0 = vcmp.ge.f32.partialorder %v165_v4, 1.0  ;;  %v295_v7 = vadd.f32 -1.0, %v165_v4  ;;  %vm168_vm1 = vcmp.ge.f32.partialorder %v166_v6, 1.0  ;;  %v296_v10 = vadd.f32 -1.0, %v166_v6  ;;  %p412_p7 = pnand %p411_p6, %p405_p2 }
  0x3f   : > { %v297_v9 = vsel %vm167_vm0, 1.0, %v488_v8  ;;  %v298_v11 = vsel %vm168_vm1, 1.0, %v488_v8 }
  0x40   : > { %179 = vst [vmem:[%s152_s24] sm:$0xff] %v297_v9  ;;  %v171_v12 = vsel %vm167_vm0, %v295_v7, %v165_v4  ;;  %180 = vst [vmem:[%s152_s24 + $0x8] sm:$0xff] %v298_v11  ;;  %v172_v13 = vsel %vm168_vm1, %v296_v10, %v166_v6 }
  0x41   : > { %173 = vst [vmem:[#allocation2] sm:$0xff] %v171_v12  ;;  %174 = vst [vmem:[#allocation2 + $0x8] sm:$0xff] %v172_v13 }
  0x42   : > { %415 = shalt.err (!%p412_p7)
}
  0x43   : > { %s416_s4 = scalar_lea.hbm %s598_s28, 256  ;;  %s420_s13 = scalar_lea.hbm %s648_s1, 2048 }
  0x44   : > { %p417_p10 = scmp.ne.s32.totalorder %s598_s28, %s416_s4  ;;  %p421_p1 = scmp.lt.s32.totalorder %s598_s28, %s648_s1 }
  0x45   : > { %p422_p13 = scmp.lt.s32.totalorder %s420_s13, %s416_s4 }
  0x46   : > { %p418_p4 = pnand %p417_p10, %p553_p9 }
  0x47   : > { %p423_p8 = por %p422_p13, %p421_p1 }
  0x48   : > { %p419_p12 = pneg %p418_p4 }
  0x4a   : > { %p424_p0 = pnand %p423_p8, %p419_p12 }
  0x4c   : > { %427 = shalt.err (!%p424_p0)
}
  0x4d   : > { %s490_s22 = smov 128   ;;  %s491_s23 = smov 8  }
  0x4e   : > { %308 = dma.vmem_to_hbm [thread:$0]  (%p553_p9), %s600_s26, 256, %s598_s28, %s182_s9, %s490_s22, %s490_s22, %s491_s23  }
  0x4f PF: > { %p319_p2 = scmp.ge.s32.totalorder %s482_s11, 2  ;;  %s212_s24 = sand.u32 1, %s462_s6  }
  0x50   : > { %s213_s25 = scalar_lea.sflag [#allocation5], %s212_s24 }
  0x51   : > { %p315_p3 = pnand %p319_p2, %p560_p11 }
  0x53   : > { %p316_p5 = pneg %p315_p3 }
  0x55   : > { %457 = dma.done.wait (%p316_p5), %s213_s25, 256  }
  0x56   : > { %459 = vsyncadd (%p316_p5), %s213_s25, 4294967040  ;;  %s17_s11 = sadd.s32 1, %s482_s11   ;;  %s654_s6 = smov %s466_s7 }
  0x57   : > { %p14_p6 = scmp.ge.s32.totalorder %s17_s11, 10   ;;  %s655_s7 = smov %s470_s8 }
  0x58   : > { %s656_s8 = smov %s558_s20  ;;  %s657_s9 = smov %s478_s10 }
  0x59   : > { %s658_s10 = smov %s660_s14  ;;  %16 = sbr.rel (!%p14_p6) target bundleno = 6 (0x6), region = 73 }
  0x5e   :  { %218 = vsyncpa [#allocation4], 1 }
  0x5f   :  { %220 = vsyncpa [#allocation4 + $0x1], 1 }
  0x60   :  { %221 = vsyncpa [#allocation5], 1 }
  0x61   :  { %223 = vsyncpa [#allocation5 + $0x1], 1 }

</bundles_post_ra>
